<compile_context>
chip_gen: v7x
topology: tpu7x:2x2x1
jax: 0.10.0
libtpu: 0.0.40
codegen_flags: <defaults>
</compile_context>

<pallas_src>
import functools

import jax
import jax.numpy as jnp
from jax.experimental import pallas as pl
from jax.experimental.pallas import tpu as pltpu


# ----------------------------------------------------------------------------
# Fused kernel. One grid step = G graphs. All matmuls use the MXU with
# bf16 (or f32) operands and f32 accumulation.
# ----------------------------------------------------------------------------
def gnn_kernel(adj_ref, invdeg_ref, x_ref,
               w0_ref,    # (2F, H)  [wl0; wr0]            (compute dtype)
               whh_ref,   # (4H, H)  [w11; w12; wl2; wr2]  (compute dtype)
               wf_ref,    # (2H, OP) [wlf; wrf], lane-padded, pad cols = 0
               vecs_ref,  # (10, H)  f32: b0,s0,t0,b11,b12,s1,t1,b2,s2,t2
               bf_ref,    # (1, OP)  f32 final bias, pad lanes = -1e30
               out_ref):  # (G, N, OP)
    f32 = jnp.float32
    G, N, _ = adj_ref.shape
    H = vecs_ref.shape[1]
    GN = G * N

    adj = adj_ref[...]                     # (G, N, N)  compute dtype
    inv = invdeg_ref[...].reshape(GN, 1)   # (GN, 1)    f32 (kept exact)
    x2 = x_ref[...].reshape(GN, -1)        # (GN, F)    f32
    cdt = adj.dtype

    def mm(a, w):                          # MXU matmul, f32 accumulation
        return jnp.dot(a.astype(cdt), w, preferred_element_type=f32)

    def nbr_sum(h2):                       # batched per-graph adj @ h
        h3 = h2.reshape(G, N, -1).astype(cdt)
        r = jnp.einsum('gij,gjk->gik', adj, h3, preferred_element_type=f32)
        return r.reshape(GN, -1)

    vecs = vecs_ref[...]
    b0, s0, t0 = vecs[0:1], vecs[1:2], vecs[2:3]
    b11, b12 = vecs[3:4], vecs[4:5]
    s1, t1 = vecs[5:6], vecs[6:7]
    b2, s2, t2 = vecs[7:8], vecs[8:9], vecs[9:10]
    bf = bf_ref[...]                       # (1, OP)

    w0 = w0_ref[...]                       # (2F, H)
    w11 = whh_ref[0:H, :]
    w12 = whh_ref[H:2 * H, :]
    w2 = whh_ref[2 * H:4 * H, :]           # (2H, H)
    wf = wf_ref[...]                       # (2H, OP)

    # ---- layer 0: SAGEConv(F->H) fused, BN, ReLU (no residual) -------------
    mean0 = inv * nbr_sum(x2)                                   # (GN, F)
    cat0 = jnp.concatenate([mean0, x2], axis=1)                 # (GN, 2F)
    h = mm(cat0, w0) + b0
    h = jnp.maximum(h * s0 + t0, 0.0)                           # (GN, H) f32

    # ---- layer 1: GINConv (eps=0) + BN + ReLU + residual --------------------
    agg1 = nbr_sum(h) + h                                       # (1+eps)x + sum
    z = jnp.maximum(mm(agg1, w11) + b11, 0.0)
    z = mm(z, w12) + b12
    z = jnp.maximum(z * s1 + t1, 0.0)
    h = z + h

    # ---- layer 2: SAGEConv(H->H) fused + BN + ReLU + residual ---------------
    mean2 = inv * nbr_sum(h)
    cat2 = jnp.concatenate([mean2, h], axis=1)                  # (GN, 2H)
    z = mm(cat2, w2) + b2
    z = jnp.maximum(z * s2 + t2, 0.0)
    h = z + h

    # ---- final SAGEConv(H->O) fused; output already lane-padded to OP -------
    meanf = inv * nbr_sum(h)
    catf = jnp.concatenate([meanf, h], axis=1)                  # (GN, 2H)
    o = mm(catf, wf) + bf                  # (GN, OP); pad columns == -1e30

    # log_softmax over the full (padded) lane width: pad lanes contribute 0
    m = jnp.max(o, axis=1, keepdims=True)
    e = jnp.exp(o - m)
    lse = jnp.log(jnp.sum(e, axis=1, keepdims=True))
    out = (o - m - lse).astype(out_ref.dtype)
    out_ref[...] = out.reshape(G, N, -1)


@functools.partial(jax.jit, static_argnames=("use_bf16",))
def enhanced_gnn_forward(x, edge_index, params, use_bf16=True):
    """x: (B, N, F) f32; edge_index: (B, 2, E) int32; params: dict of raw f32."""
    b, n, f = x.shape
    hdim = params["wl0"].shape[1]
    o = params["wlf"].shape[1]
    o_pad = max(128, ((o + 127) // 128) * 128)
    cdt = jnp.bfloat16 if use_bf16 else jnp.float32

    # Graphs folded into each grid step (static): amortizes the ~600-cycle
    # per-step pipeline overhead and enlarges the weight-matmul M dim.
    gps = min(b, 8)
    b_pad = ((b + gps - 1) // gps) * gps

    # ---- dense adjacency + inverse degree (built by XLA, outside the kernel)
    def build_adj(eig):
        src, dst = eig[0], eig[1]
        ones = jnp.ones(src.shape[0], jnp.float32)
        # adj[dst, src] = edge multiplicity (messages flow src -> dst)
        adj = jnp.zeros((n, n), jnp.float32).at[dst, src].add(ones)
        deg = jnp.sum(adj, axis=1, keepdims=True)
        inv = jnp.where(deg > 0.0, 1.0 / jnp.maximum(deg, 1.0), 0.0)
        return adj, inv

    adj_sum, inv_deg = jax.vmap(build_adj)(edge_index)
    adj_sum = adj_sum.astype(cdt)   # small integer edge counts: exact in bf16

    xp = x
    if b_pad != b:
        bpad = ((0, b_pad - b), (0, 0), (0, 0))
        adj_sum = jnp.pad(adj_sum, bpad)
        inv_deg = jnp.pad(inv_deg, bpad)
        xp = jnp.pad(x, bpad)

    # ---- pack / fuse parameters (tiny tensors, few DMAs, pre-cast weights) --
    w0cat = jnp.concatenate([params["wl0"], params["wr0"]], axis=0).astype(cdt)
    whhcat = jnp.concatenate(
        [params["w11"], params["w12"], params["wl2"], params["wr2"]],
        axis=0).astype(cdt)
    wfcat = jnp.concatenate([params["wlf"], params["wrf"]], axis=0)
    wfcat = jnp.pad(wfcat, ((0, 0), (0, o_pad - o))).astype(cdt)
    vecs = jnp.stack([params[k] for k in
                      ("b0", "s0", "t0", "b11", "b12",
                       "s1", "t1", "b2", "s2", "t2")]).astype(jnp.float32)
    bf = jnp.full((1, o_pad), -1e30, jnp.float32).at[:, :o].set(params["bf"])

    def batched_spec(shape):
        nd = len(shape)
        return pl.BlockSpec((gps,) + shape, lambda i, _nd=nd: (i,) + (0,) * _nd)

    def full_spec(arr):
        return pl.BlockSpec(arr.shape, lambda i, _nd=arr.ndim: (0,) * _nd)

    in_specs = [
        batched_spec((n, n)),        # adj_sum
        batched_spec((n, 1)),        # inv_deg
        batched_spec((n, f)),        # x
        full_spec(w0cat), full_spec(whhcat), full_spec(wfcat),
        full_spec(vecs), full_spec(bf),
    ]
    out_specs = batched_spec((n, o_pad))

    # VMEM budget: double-buffered per-step slabs + (tiny) parameters.
    adj_item = jnp.dtype(cdt).itemsize
    per_step = gps * n * (n * adj_item + 4 + f * 4 + o_pad * 4)
    param_bytes = sum(int(a.size) * jnp.dtype(a.dtype).itemsize
                      for a in (w0cat, whhcat, wfcat, vecs, bf))
    resident = 2 * per_step + 2 * param_bytes
    try:
        info = pltpu.get_tpu_info()
        vmem_cap = int(getattr(info, "vmem_capacity_bytes", 64 * 1024 * 1024))
    except Exception:
        vmem_cap = 64 * 1024 * 1024   # conservative (v7x per-TC VMEM)
    vmem_limit = int(min(max(4 * resident, 32 * 1024 * 1024),
                         int(0.72 * vmem_cap)))

    out = pl.pallas_call(
        gnn_kernel,
        out_shape=jax.ShapeDtypeStruct((b_pad, n, o_pad), jnp.float32),
        grid=(b_pad // gps,),
        in_specs=in_specs,
        out_specs=out_specs,
        compiler_params=pltpu.CompilerParams(
            # TODO(synk): on v7x, verify both TensorCores are used for this
            # axis; if not, switch to pltpu.CORE_PARALLEL semantics.
            dimension_semantics=("parallel",),
            vmem_limit_bytes=vmem_limit,
        ),
    )(adj_sum, inv_deg, xp, w0cat, whhcat, wfcat, vecs, bf)

    return out[:b, :, :o]


# ----------------------------------------------------------------------------
# Pure-JAX f32 reference (same math) for validation.
# ----------------------------------------------------------------------------
def enhanced_gnn_reference(x, edge_index, p):
    def single(xg, eig):
        n = xg.shape[0]
        src, dst = eig[0], eig[1]
        adj = jnp.zeros((n, n), jnp.float32).at[dst, src].add(1.0)
        deg = adj.sum(1, keepdims=True)
        adj_mean = adj / jnp.maximum(deg, 1.0)

        h = (adj_mean @ xg) @ p["wl0"] + xg @ p["wr0"] + p["b0"]
        h = jnp.maximum(h * p["s0"] + p["t0"], 0.0)

        x_res = h
        agg = adj @ h + h
        g = jnp.maximum(agg @ p["w11"] + p["b11"], 0.0)
        g = g @ p["w12"] + p["b12"]
        g = jnp.maximum(g * p["s1"] + p["t1"], 0.0)
        h = g + x_res

        x_res = h
        g = (adj_mean @ h) @ p["wl2"] + h @ p["wr2"] + p["b2"]
        g = jnp.maximum(g * p["s2"] + p["t2"], 0.0)
        h = g + x_res

        o = (adj_mean @ h) @ p["wlf"] + h @ p["wrf"] + p["bf"]
        return jax.nn.log_softmax(o, axis=1)

    return jax.vmap(single)(x, edge_index)


def make_params(key, input_dim, hidden_dims, output_dim):
    """Deterministic synthetic parameters (raw f32).

    Weights stored as (in, out) so the kernel uses x @ W directly. Eval-mode
    BatchNorm is folded into per-channel scale/shift. NOTE: this fused kernel
    assumes all hidden dims are equal (as in the demo [32, 32, 32]).
    """
    h = hidden_dims[0]
    assert all(d == h for d in hidden_dims)
    eps_bn = 1e-5
    keys = iter(jax.random.split(key, 32))

    def w(shape, scale=0.1):
        return (scale * jax.random.normal(next(keys), shape)).astype(jnp.float32)

    def bn_fold(c, k):
        gamma = 1.0 + 0.01 * jax.random.normal(k, (c,))
        beta = 0.01 * jnp.arange(c, dtype=jnp.float32)
        running_mean = jnp.zeros((c,), jnp.float32)
        running_var = jnp.ones((c,), jnp.float32)
        scale = (gamma / jnp.sqrt(running_var + eps_bn)).astype(jnp.float32)
        shift = (beta - running_mean * scale).astype(jnp.float32)
        return scale, shift

    p = {}
    # layer 0: SAGEConv(input_dim, h)
    p["wl0"], p["wr0"], p["b0"] = w((input_dim, h)), w((input_dim, h)), w((h,))
    p["s0"], p["t0"] = bn_fold(h, next(keys))
    # layer 1: GINConv(Linear(h,h) -> ReLU -> Linear(h,h))
    p["w11"], p["b11"] = w((h, h)), w((h,))
    p["w12"], p["b12"] = w((h, h)), w((h,))
    p["s1"], p["t1"] = bn_fold(h, next(keys))
    # layer 2: SAGEConv(h, h)
    p["wl2"], p["wr2"], p["b2"] = w((h, h)), w((h, h)), w((h,))
    p["s2"], p["t2"] = bn_fold(h, next(keys))
    # final: SAGEConv(h, output_dim)
    p["wlf"], p["wrf"], p["bf"] = (w((h, output_dim)), w((h, output_dim)),
                                   w((output_dim,)))
    return p


if __name__ == "__main__":
    key = jax.random.PRNGKey(0)
    k_x, k_e, k_p = jax.random.split(key, 3)

    # Batch of 4 small graphs: 16 nodes, 8-dim features, 40 directed edges each.
    batch, num_nodes, input_dim = 4, 16, 8
    hidden_dims = [32, 32, 32]
    output_dim = 4
    num_edges = 40

    x = jax.random.normal(k_x, (batch, num_nodes, input_dim), dtype=jnp.float32)
    edge_index = jax.random.randint(
        k_e, (batch, 2, num_edges), 0, num_nodes, dtype=jnp.int32)
    params = make_params(k_p, input_dim, hidden_dims, output_dim)

    # Fast path: bf16 MXU operands, f32 accumulation / elementwise.
    out = enhanced_gnn_forward(x, edge_index, params, use_bf16=True)
    out = jax.block_until_ready(out)
    assert out.shape == (batch, num_nodes, output_dim)

    # log_softmax rows must exponentiate-sum to 1.
    row_sums = jnp.sum(jnp.exp(out), axis=-1)
    assert bool(jnp.all(jnp.abs(row_sums - 1.0) < 1e-4))

    # Validate against pure-JAX f32 reference (f32 kernel path: tight tol;
    # bf16 path: loose tol — error compounds across 4 matmul layers).
    ref = jax.block_until_ready(enhanced_gnn_reference(x, edge_index, params))
    out_f32 = jax.block_until_ready(
        enhanced_gnn_forward(x, edge_index, params, use_bf16=False))
    assert bool(jnp.allclose(out_f32, ref, atol=1e-3, rtol=1e-3))
    assert bool(jnp.allclose(out, ref, atol=1e-1, rtol=1e-1))

    print("KERNEL_OK")
</pallas_src>

<mosaic_0001>
module attributes {stable_mosaic.version = 11 : i64} {
  func.func private @main(%arg0: i32) attributes {dimension_semantics = [#tpu.dimension_semantics<core_parallel>], iteration_bounds = array<i64: 2>, tpu.core_type = #tpu.core_type<sc_scalar_subcore>, window_params = []} {
    return
  }
}

module attributes {stable_mosaic.version = 11 : i64} {
  func.func private @main(%arg0: i32) attributes {dimension_semantics = [#tpu.dimension_semantics<core_parallel>], iteration_bounds = array<i64: 2>, tpu.core_type = #tpu.core_type<sc_scalar_subcore>, window_params = []} {
    return
  }
}

module attributes {stable_mosaic.version = 11 : i64} {
  func.func @gnn_kernel(%arg0: i32, %arg1: memref<4x16x16xbf16, #tpu.memory_space<vmem>>, %arg2: memref<4x16x1xf32, #tpu.memory_space<vmem>>, %arg3: memref<4x16x8xf32, #tpu.memory_space<vmem>>, %arg4: memref<16x32xbf16, #tpu.memory_space<vmem>>, %arg5: memref<128x32xbf16, #tpu.memory_space<vmem>>, %arg6: memref<64x128xbf16, #tpu.memory_space<vmem>>, %arg7: memref<10x32xf32, #tpu.memory_space<vmem>>, %arg8: memref<1x128xf32, #tpu.memory_space<vmem>>, %arg9: memref<4x16x128xf32, #tpu.memory_space<vmem>>) attributes {dimension_semantics = [#tpu.dimension_semantics<parallel>], iteration_bounds = array<i64: 1>, scalar_prefetch = 0 : i64, scratch_operands = 0 : i64, tpu.core_type = #tpu.core_type<tc>, window_params = [{transform_indices = @transform_0, window_bounds = array<i64: 4, 16, 16>}, {transform_indices = @transform_1, window_bounds = array<i64: 4, 16, 1>}, {transform_indices = @transform_2, window_bounds = array<i64: 4, 16, 8>}, {pipeline_mode = #tpu.pipeline_mode<synchronous>, transform_indices = @transform_3, window_bounds = array<i64: 16, 32>}, {pipeline_mode = #tpu.pipeline_mode<synchronous>, transform_indices = @transform_4, window_bounds = array<i64: 128, 32>}, {pipeline_mode = #tpu.pipeline_mode<synchronous>, transform_indices = @transform_5, window_bounds = array<i64: 64, 128>}, {pipeline_mode = #tpu.pipeline_mode<synchronous>, transform_indices = @transform_6, window_bounds = array<i64: 10, 32>}, {pipeline_mode = #tpu.pipeline_mode<synchronous>, transform_indices = @transform_7, window_bounds = array<i64: 1, 128>}, {transform_indices = @transform_8, window_bounds = array<i64: 4, 16, 128>}]} {
    %c0 = arith.constant 0 : index
    %c0_0 = arith.constant 0 : index
    %c0_1 = arith.constant 0 : index
    %0 = vector.load %arg1[%c0, %c0_0, %c0_1] : memref<4x16x16xbf16, #tpu.memory_space<vmem>>, vector<4x16x16xbf16>
    %c0_2 = arith.constant 0 : index
    %c0_3 = arith.constant 0 : index
    %c0_4 = arith.constant 0 : index
    %1 = vector.load %arg2[%c0_2, %c0_3, %c0_4] : memref<4x16x1xf32, #tpu.memory_space<vmem>>, vector<4x16x1xf32>
    %2 = vector.shape_cast %1 : vector<4x16x1xf32> to vector<64x1xf32>
    %c0_5 = arith.constant 0 : index
    %c0_6 = arith.constant 0 : index
    %c0_7 = arith.constant 0 : index
    %3 = vector.load %arg3[%c0_5, %c0_6, %c0_7] : memref<4x16x8xf32, #tpu.memory_space<vmem>>, vector<4x16x8xf32>
    %4 = vector.shape_cast %3 : vector<4x16x8xf32> to vector<64x8xf32>
    %c0_8 = arith.constant 0 : index
    %c0_9 = arith.constant 0 : index
    %5 = vector.load %arg7[%c0_8, %c0_9] : memref<10x32xf32, #tpu.memory_space<vmem>>, vector<10x32xf32>
    %6 = vector.extract_strided_slice %5 {offsets = [0, 0], sizes = [1, 32], strides = [1, 1]} : vector<10x32xf32> to vector<1x32xf32>
    %7 = vector.extract_strided_slice %5 {offsets = [1, 0], sizes = [1, 32], strides = [1, 1]} : vector<10x32xf32> to vector<1x32xf32>
    %8 = vector.extract_strided_slice %5 {offsets = [2, 0], sizes = [1, 32], strides = [1, 1]} : vector<10x32xf32> to vector<1x32xf32>
    %9 = vector.extract_strided_slice %5 {offsets = [3, 0], sizes = [1, 32], strides = [1, 1]} : vector<10x32xf32> to vector<1x32xf32>
    %10 = vector.extract_strided_slice %5 {offsets = [4, 0], sizes = [1, 32], strides = [1, 1]} : vector<10x32xf32> to vector<1x32xf32>
    %11 = vector.extract_strided_slice %5 {offsets = [5, 0], sizes = [1, 32], strides = [1, 1]} : vector<10x32xf32> to vector<1x32xf32>
    %12 = vector.extract_strided_slice %5 {offsets = [6, 0], sizes = [1, 32], strides = [1, 1]} : vector<10x32xf32> to vector<1x32xf32>
    %13 = vector.extract_strided_slice %5 {offsets = [7, 0], sizes = [1, 32], strides = [1, 1]} : vector<10x32xf32> to vector<1x32xf32>
    %14 = vector.extract_strided_slice %5 {offsets = [8, 0], sizes = [1, 32], strides = [1, 1]} : vector<10x32xf32> to vector<1x32xf32>
    %15 = vector.extract_strided_slice %5 {offsets = [9, 0], sizes = [1, 32], strides = [1, 1]} : vector<10x32xf32> to vector<1x32xf32>
    %c0_10 = arith.constant 0 : index
    %c0_11 = arith.constant 0 : index
    %16 = vector.load %arg8[%c0_10, %c0_11] : memref<1x128xf32, #tpu.memory_space<vmem>>, vector<1x128xf32>
    %c0_12 = arith.constant 0 : index
    %c0_13 = arith.constant 0 : index
    %17 = vector.load %arg4[%c0_12, %c0_13] : memref<16x32xbf16, #tpu.memory_space<vmem>>, vector<16x32xbf16>
    %c0_14 = arith.constant 0 : index
    %c0_15 = arith.constant 0 : index
    %18 = vector.load %arg5[%c0_14, %c0_15] : memref<128x32xbf16, #tpu.memory_space<vmem>>, vector<32x32xbf16>
    %c32 = arith.constant 32 : index
    %c0_16 = arith.constant 0 : index
    %19 = vector.load %arg5[%c32, %c0_16] : memref<128x32xbf16, #tpu.memory_space<vmem>>, vector<32x32xbf16>
    %c64 = arith.constant 64 : index
    %c0_17 = arith.constant 0 : index
    %20 = vector.load %arg5[%c64, %c0_17] : memref<128x32xbf16, #tpu.memory_space<vmem>>, vector<64x32xbf16>
    %c0_18 = arith.constant 0 : index
    %c0_19 = arith.constant 0 : index
    %21 = vector.load %arg6[%c0_18, %c0_19] : memref<64x128xbf16, #tpu.memory_space<vmem>>, vector<64x128xbf16>
    %22 = vector.shape_cast %4 : vector<64x8xf32> to vector<4x16x8xf32>
    %23 = arith.truncf %22 : vector<4x16x8xf32> to vector<4x16x8xbf16>
    "tpu.trace_start"() <{level = 10 : i32, message = "gij,gjk->gik"}> : () -> ()
    %cst = arith.constant dense<0.000000e+00> : vector<4x16x8xf32>
    %24 = tpu.matmul %0, %23, %cst {dimension_numbers = #tpu.dot_dimension_numbers<[2], [1], [1], [2], [0, 0, 0, 1, 1, 2], [0], [0]>} : vector<4x16x16xbf16>, vector<4x16x8xbf16>, vector<4x16x8xf32> -> vector<4x16x8xf32>
    "tpu.trace_stop"() : () -> ()
    %25 = vector.shape_cast %24 : vector<4x16x8xf32> to vector<64x8xf32>
    %26 = vector.broadcast %2 : vector<64x1xf32> to vector<64x8xf32>
    %27 = arith.mulf %26, %25 : vector<64x8xf32>
    %28 = tpu.concatenate %27, %4 in 1 : vector<64x8xf32>, vector<64x8xf32> -> vector<64x16xf32>
    %29 = arith.truncf %28 : vector<64x16xf32> to vector<64x16xbf16>
    %cst_20 = arith.constant dense<0.000000e+00> : vector<64x32xf32>
    %30 = tpu.matmul %29, %17, %cst_20 {dimension_numbers = #tpu.dot_dimension_numbers<[1], [0], [0], [1], [0, 0, 1, 1], [], []>} : vector<64x16xbf16>, vector<16x32xbf16>, vector<64x32xf32> -> vector<64x32xf32>
    %31 = vector.broadcast %6 : vector<1x32xf32> to vector<64x32xf32>
    %32 = arith.addf %30, %31 : vector<64x32xf32>
    %33 = vector.broadcast %7 : vector<1x32xf32> to vector<64x32xf32>
    %34 = arith.mulf %32, %33 : vector<64x32xf32>
    %35 = vector.broadcast %8 : vector<1x32xf32> to vector<64x32xf32>
    %36 = arith.addf %34, %35 : vector<64x32xf32>
    %cst_21 = arith.constant 0.000000e+00 : f32
    %37 = vector.broadcast %cst_21 : f32 to vector<64x32xf32>
    %38 = arith.maximumf %36, %37 : vector<64x32xf32>
    %39 = vector.shape_cast %38 : vector<64x32xf32> to vector<4x16x32xf32>
    %40 = arith.truncf %39 : vector<4x16x32xf32> to vector<4x16x32xbf16>
    "tpu.trace_start"() <{level = 10 : i32, message = "gij,gjk->gik"}> : () -> ()
    %cst_22 = arith.constant dense<0.000000e+00> : vector<4x16x32xf32>
    %41 = tpu.matmul %0, %40, %cst_22 {dimension_numbers = #tpu.dot_dimension_numbers<[2], [1], [1], [2], [0, 0, 0, 1, 1, 2], [0], [0]>} : vector<4x16x16xbf16>, vector<4x16x32xbf16>, vector<4x16x32xf32> -> vector<4x16x32xf32>
    "tpu.trace_stop"() : () -> ()
    %42 = vector.shape_cast %41 : vector<4x16x32xf32> to vector<64x32xf32>
    %43 = arith.addf %42, %38 : vector<64x32xf32>
    %44 = arith.truncf %43 : vector<64x32xf32> to vector<64x32xbf16>
    %cst_23 = arith.constant dense<0.000000e+00> : vector<64x32xf32>
    %45 = tpu.matmul %44, %18, %cst_23 {dimension_numbers = #tpu.dot_dimension_numbers<[1], [0], [0], [1], [0, 0, 1, 1], [], []>} : vector<64x32xbf16>, vector<32x32xbf16>, vector<64x32xf32> -> vector<64x32xf32>
    %46 = vector.broadcast %9 : vector<1x32xf32> to vector<64x32xf32>
    %47 = arith.addf %45, %46 : vector<64x32xf32>
    %cst_24 = arith.constant 0.000000e+00 : f32
    %48 = vector.broadcast %cst_24 : f32 to vector<64x32xf32>
    %49 = arith.maximumf %47, %48 : vector<64x32xf32>
    %50 = arith.truncf %49 : vector<64x32xf32> to vector<64x32xbf16>
    %cst_25 = arith.constant dense<0.000000e+00> : vector<64x32xf32>
    %51 = tpu.matmul %50, %19, %cst_25 {dimension_numbers = #tpu.dot_dimension_numbers<[1], [0], [0], [1], [0, 0, 1, 1], [], []>} : vector<64x32xbf16>, vector<32x32xbf16>, vector<64x32xf32> -> vector<64x32xf32>
    %52 = vector.broadcast %10 : vector<1x32xf32> to vector<64x32xf32>
    %53 = arith.addf %51, %52 : vector<64x32xf32>
    %54 = vector.broadcast %11 : vector<1x32xf32> to vector<64x32xf32>
    %55 = arith.mulf %53, %54 : vector<64x32xf32>
    %56 = vector.broadcast %12 : vector<1x32xf32> to vector<64x32xf32>
    %57 = arith.addf %55, %56 : vector<64x32xf32>
    %cst_26 = arith.constant 0.000000e+00 : f32
    %58 = vector.broadcast %cst_26 : f32 to vector<64x32xf32>
    %59 = arith.maximumf %57, %58 : vector<64x32xf32>
    %60 = arith.addf %59, %38 : vector<64x32xf32>
    %61 = vector.shape_cast %60 : vector<64x32xf32> to vector<4x16x32xf32>
    %62 = arith.truncf %61 : vector<4x16x32xf32> to vector<4x16x32xbf16>
    "tpu.trace_start"() <{level = 10 : i32, message = "gij,gjk->gik"}> : () -> ()
    %cst_27 = arith.constant dense<0.000000e+00> : vector<4x16x32xf32>
    %63 = tpu.matmul %0, %62, %cst_27 {dimension_numbers = #tpu.dot_dimension_numbers<[2], [1], [1], [2], [0, 0, 0, 1, 1, 2], [0], [0]>} : vector<4x16x16xbf16>, vector<4x16x32xbf16>, vector<4x16x32xf32> -> vector<4x16x32xf32>
    "tpu.trace_stop"() : () -> ()
    %64 = vector.shape_cast %63 : vector<4x16x32xf32> to vector<64x32xf32>
    %65 = vector.broadcast %2 : vector<64x1xf32> to vector<64x32xf32>
    %66 = arith.mulf %65, %64 : vector<64x32xf32>
    %67 = tpu.concatenate %66, %60 in 1 : vector<64x32xf32>, vector<64x32xf32> -> vector<64x64xf32>
    %68 = arith.truncf %67 : vector<64x64xf32> to vector<64x64xbf16>
    %cst_28 = arith.constant dense<0.000000e+00> : vector<64x32xf32>
    %69 = tpu.matmul %68, %20, %cst_28 {dimension_numbers = #tpu.dot_dimension_numbers<[1], [0], [0], [1], [0, 0, 1, 1], [], []>} : vector<64x64xbf16>, vector<64x32xbf16>, vector<64x32xf32> -> vector<64x32xf32>
    %70 = vector.broadcast %13 : vector<1x32xf32> to vector<64x32xf32>
    %71 = arith.addf %69, %70 : vector<64x32xf32>
    %72 = vector.broadcast %14 : vector<1x32xf32> to vector<64x32xf32>
    %73 = arith.mulf %71, %72 : vector<64x32xf32>
    %74 = vector.broadcast %15 : vector<1x32xf32> to vector<64x32xf32>
    %75 = arith.addf %73, %74 : vector<64x32xf32>
    %cst_29 = arith.constant 0.000000e+00 : f32
    %76 = vector.broadcast %cst_29 : f32 to vector<64x32xf32>
    %77 = arith.maximumf %75, %76 : vector<64x32xf32>
    %78 = arith.addf %77, %60 : vector<64x32xf32>
    %79 = vector.shape_cast %78 : vector<64x32xf32> to vector<4x16x32xf32>
    %80 = arith.truncf %79 : vector<4x16x32xf32> to vector<4x16x32xbf16>
    "tpu.trace_start"() <{level = 10 : i32, message = "gij,gjk->gik"}> : () -> ()
    %cst_30 = arith.constant dense<0.000000e+00> : vector<4x16x32xf32>
    %81 = tpu.matmul %0, %80, %cst_30 {dimension_numbers = #tpu.dot_dimension_numbers<[2], [1], [1], [2], [0, 0, 0, 1, 1, 2], [0], [0]>} : vector<4x16x16xbf16>, vector<4x16x32xbf16>, vector<4x16x32xf32> -> vector<4x16x32xf32>
    "tpu.trace_stop"() : () -> ()
    %82 = vector.shape_cast %81 : vector<4x16x32xf32> to vector<64x32xf32>
    %83 = vector.broadcast %2 : vector<64x1xf32> to vector<64x32xf32>
    %84 = arith.mulf %83, %82 : vector<64x32xf32>
    %85 = tpu.concatenate %84, %78 in 1 : vector<64x32xf32>, vector<64x32xf32> -> vector<64x64xf32>
    %86 = arith.truncf %85 : vector<64x64xf32> to vector<64x64xbf16>
    %cst_31 = arith.constant dense<0.000000e+00> : vector<64x128xf32>
    %87 = tpu.matmul %86, %21, %cst_31 {dimension_numbers = #tpu.dot_dimension_numbers<[1], [0], [0], [1], [0, 0, 1, 1], [], []>} : vector<64x64xbf16>, vector<64x128xbf16>, vector<64x128xf32> -> vector<64x128xf32>
    %88 = vector.broadcast %16 : vector<1x128xf32> to vector<64x128xf32>
    %89 = arith.addf %87, %88 : vector<64x128xf32>
    %cst_32 = arith.constant dense<0xFF800000> : vector<64xf32>
    %90 = vector.multi_reduction <maximumf>, %89, %cst_32 [1] : vector<64x128xf32> to vector<64xf32>
    %91 = vector.shape_cast %90 : vector<64xf32> to vector<64x1xf32>
    %92 = vector.broadcast %91 : vector<64x1xf32> to vector<64x128xf32>
    %93 = arith.subf %89, %92 : vector<64x128xf32>
    %94 = math.exp %93 : vector<64x128xf32>
    %cst_33 = arith.constant dense<0.000000e+00> : vector<64xf32>
    %95 = vector.multi_reduction <add>, %94, %cst_33 [1] : vector<64x128xf32> to vector<64xf32>
    %96 = vector.shape_cast %95 : vector<64xf32> to vector<64x1xf32>
    %97 = math.log %96 : vector<64x1xf32>
    %98 = vector.broadcast %91 : vector<64x1xf32> to vector<64x128xf32>
    %99 = arith.subf %89, %98 : vector<64x128xf32>
    %100 = vector.broadcast %97 : vector<64x1xf32> to vector<64x128xf32>
    %101 = arith.subf %99, %100 : vector<64x128xf32>
    %102 = vector.shape_cast %101 : vector<64x128xf32> to vector<4x16x128xf32>
    %c0_34 = arith.constant 0 : index
    %c0_35 = arith.constant 0 : index
    %c0_36 = arith.constant 0 : index
    %103 = vector.load %arg9[%c0_34, %c0_35, %c0_36] : memref<4x16x128xf32, #tpu.memory_space<vmem>>, vector<4x16x128xf32>
    tpu.vector_store %arg9[%c0_34, %c0_35, %c0_36], %102 {strides = array<i32>} : memref<4x16x128xf32, #tpu.memory_space<vmem>>, vector<4x16x128xf32>,
    return
  }
  func.func @transform_0(%arg0: i32) -> (i32, i32, i32) {
    %c0_i32 = arith.constant 0 : i32
    %c0_i32_0 = arith.constant 0 : i32
    %c0_i32_1 = arith.constant 0 : i32
    return %arg0, %c0_i32, %c0_i32_0 : i32, i32, i32
  }
  func.func @transform_1(%arg0: i32) -> (i32, i32, i32) {
    %c0_i32 = arith.constant 0 : i32
    %c0_i32_0 = arith.constant 0 : i32
    %c0_i32_1 = arith.constant 0 : i32
    return %arg0, %c0_i32, %c0_i32_0 : i32, i32, i32
  }
  func.func @transform_2(%arg0: i32) -> (i32, i32, i32) {
    %c0_i32 = arith.constant 0 : i32
    %c0_i32_0 = arith.constant 0 : i32
    %c0_i32_1 = arith.constant 0 : i32
    return %arg0, %c0_i32, %c0_i32_0 : i32, i32, i32
  }
  func.func @transform_3(%arg0: i32) -> (i32, i32) {
    %c0_i32 = arith.constant 0 : i32
    %c0_i32_0 = arith.constant 0 : i32
    %c0_i32_1 = arith.constant 0 : i32
    return %c0_i32, %c0_i32_0 : i32, i32
  }
  func.func @transform_4(%arg0: i32) -> (i32, i32) {
    %c0_i32 = arith.constant 0 : i32
    %c0_i32_0 = arith.constant 0 : i32
    %c0_i32_1 = arith.constant 0 : i32
    return %c0_i32, %c0_i32_0 : i32, i32
  }
  func.func @transform_5(%arg0: i32) -> (i32, i32) {
    %c0_i32 = arith.constant 0 : i32
    %c0_i32_0 = arith.constant 0 : i32
    %c0_i32_1 = arith.constant 0 : i32
    return %c0_i32, %c0_i32_0 : i32, i32
  }
  func.func @transform_6(%arg0: i32) -> (i32, i32) {
    %c0_i32 = arith.constant 0 : i32
    %c0_i32_0 = arith.constant 0 : i32
    %c0_i32_1 = arith.constant 0 : i32
    return %c0_i32, %c0_i32_0 : i32, i32
  }
  func.func @transform_7(%arg0: i32) -> (i32, i32) {
    %c0_i32 = arith.constant 0 : i32
    %c0_i32_0 = arith.constant 0 : i32
    %c0_i32_1 = arith.constant 0 : i32
    return %c0_i32, %c0_i32_0 : i32, i32
  }
  func.func @transform_8(%arg0: i32) -> (i32, i32, i32) {
    %c0_i32 = arith.constant 0 : i32
    %c0_i32_0 = arith.constant 0 : i32
    %c0_i32_1 = arith.constant 0 : i32
    return %arg0, %c0_i32, %c0_i32_0 : i32, i32, i32
  }
}

</mosaic_0001>

<bundles_post_ra>
// kernel: enhanced_gnn_forward.1
= control target key start
LH: loop header
LB: loop body
LE: loop exit
PB: predicated region body
PF: predicated region fallthrough
CT: control target
= control target key end

     0   :  { %v2097_v0 = vmov 0.0   ;;  %vm2098_vm0 = vmmov 0   ;;  %v2099_v8 = vmov 0   ;;  %vm92_vm1 = vcmask 130048   ;;  %s2101_s10 = smov 32   ;;  %s2599_s2 = inlined_call_operand.vmem [shape: f32[4,16,8], index: 2, kind: input, shape index: {}]   ;;  %s2600_s0 = inlined_call_operand.vmem [shape: bf16[4,16,16], index: 0, kind: input, shape index: {}]   ;;  %s2601_s1 = inlined_call_operand.vmem [shape: f32[4,16,1], index: 1, kind: input, shape index: {}]   ;;  %s2602_s3 = inlined_call_operand.vmem [shape: bf16[16,32], index: 3, kind: input, shape index: {}]   ;;  %s2603_s6 = inlined_call_operand.vmem [shape: f32[10,32], index: 6, kind: input, shape index: {}]   ;;  %s2604_s4 = inlined_call_operand.vmem [shape: bf16[128,32], index: 4, kind: input, shape index: {}]   ;;  %s2605_s5 = inlined_call_operand.vmem [shape: bf16[64,128], index: 5, kind: input, shape index: {}]   ;;  %s2606_s7 = inlined_call_operand.vmem [shape: f32[1,128], index: 7, kind: input, shape index: {}]   ;;  %s2607_s8 = inlined_call_operand.vmem [shape: f32[4,16,128], index: 8, kind: output, shape index: {}]  }
   0x1   :  { %1819 = vmatprep.subr.bf16.mxu0 %v2097_v0  ;;  %1837 = vmatprep.subr.bf16.mxu1 %v2097_v0  ;;  %v46_v1 = vld [vmem:[%s2599_s2] sm:$0xff]  ;;  %v47_v2 = vld [vmem:[%s2599_s2 + $0x8] sm:$0xff]  ;;  %v52_v3 = vld [vmem:[%s2599_s2 + $0x30] sm:$0xff]  ;;  %vm364_vm2 = vcmask 64512   ;;  %vm692_vm3 = vcmask 261120   ;;  %vm1163_vm4 = vcmask 523264  }
   0x2   :  { %v83_v4 = vpack.c.bf16 %v47_v2, %v46_v1  ;;  %v53_v5 = vld [vmem:[%s2599_s2 + $0x38] sm:$0xff]  ;;  %1821 = vmatprep.mubr.msk.bf16.mxu0 %vm2098_vm0, %v2097_v0  ;;  %1839 = vmatprep.mubr.msk.bf16.mxu1 %vm2098_vm0, %v2097_v0  ;;  %v2168_v7 = vld [vmem:[%s2600_s0] sm:$0xff]   ;;  %v48_v10 = vld [vmem:[%s2599_s2 + $0x10] sm:$0xff]  ;;  %v1988_v21 = vpack.i.bf16 %v47_v2, %v46_v1 }
   0x3   :  { %v86_v6 = vpack.c.bf16 %v53_v5, %v52_v3  ;;  %1987 = vset.pattern.permute.xlu1 %v2099_v8  ;;  %1986 = vset.pattern.permute.xlu0 %v2099_v8  ;;  %v2173_v9 = vld [vmem:[%s2600_s0 + $0x18] sm:$0xff]   ;;  %v40_v13 = vld [vmem:[%s2601_s1 + $0x10] sm:$0xff]  ;;  %v38_v14 = vld [vmem:[%s2601_s1] sm:$0xff]  ;;  %v2003_v28 = vpack.i.bf16 %v53_v5, %v52_v3 }
   0x4   :  { %1820 = vmatpush3.bf16.msra.mxu0 %v83_v4  ;;  %v49_v11 = vld [vmem:[%s2599_s2 + $0x18] sm:$0xff]  ;;  %v50_v15 = vld [vmem:[%s2599_s2 + $0x20] sm:$0xff]  ;;  %v51_v16 = vld [vmem:[%s2599_s2 + $0x28] sm:$0xff]  ;;  %296 = vperm.xlu1 %1987, %v40_v13   ;;  %s2100_s2 = smov 8  }
   0x5   :  { %1838 = vmatpush3.bf16.msra.mxu1 %v86_v6  ;;  %1825 = vmatprep.subr.bf16.mxu0 %v2097_v0  ;;  %v84_v12 = vpack.c.bf16 %v49_v11, %v48_v10  ;;  %v2205_v17 = vld [vmem:[%s2600_s0 + $0x8] sm:$0xff]   ;;  %v41_v18 = vld [vmem:[%s2601_s1 + $0x18] sm:$0xff]  ;;  %v85_v20 = vpack.c.bf16 %v51_v16, %v50_v15  ;;  %v1993_v22 = vpack.i.bf16 %v49_v11, %v48_v10  ;;  %v2222_v23 = vld [vmem:[%s2600_s0 + $0x10] sm:$0xff]  }
   0x6   :  { %1853 = vmatprep.subr.bf16.mxu1 %v2097_v0  ;;  %286 = vperm.xlu0 %1986, %v38_v14   ;;  %v39_v19 = vld [vmem:[%s2601_s1 + $0x8] sm:$0xff]  ;;  %v42_v25 = vld [vmem:[%s2601_s1 + $0x20] sm:$0xff]  ;;  %v45_v26 = vld [vmem:[%s2601_s1 + $0x38] sm:$0xff]  ;;  %v1998_v29 = vpack.i.bf16 %v51_v16, %v50_v15 }
   0x7   :  { %1822 = vmatmul.mubr.msk.bf16.vlgmr.msra.gmra.mrb[0].mxu0 %vm92_vm1, %v2168_v7  ;;  %v43_v24 = vld [vmem:[%s2601_s1 + $0x28] sm:$0xff]  ;;  %v44_v27 = vld [vmem:[%s2601_s1 + $0x30] sm:$0xff]  ;;  %v2052_v30 = vld [vmem:[%s2602_s3] sm:$0xff]  }
   0x8   :  { %1840 = vmatmul.mubr.msk.bf16.vlgmr.msra.gmra.mrb[0].mxu1 %vm92_vm1, %v2173_v9  ;;  %1826 = vmatpush3.bf16.msra.mxu0 %v84_v12 }
   0x9   :  { %1827 = vmatprep.mubr.msk.bf16.mxu0 %vm2098_vm0, %v2097_v0  ;;  %1831 = vmatprep.subr.bf16.mxu0 %v2097_v0 }
   0xa   :  { %1855 = vmatprep.mubr.msk.bf16.mxu1 %vm2098_vm0, %v2097_v0  ;;  %301 = vperm.xlu1 %1987, %v41_v18  }
   0xb   :  { %291 = vperm.xlu0 %1986, %v39_v19  }
   0xe   :  { %1994 = vrot.lane.b32.xlu1 %v1993_v22, %s2100_s2 }
   0xf   :  { %1828 = vmatmul.mubr.msk.bf16.vlgmr.msra.gmra.mrb[4].mxu0 %vm92_vm1, %v2205_v17  ;;  %1989 = vrot.lane.b32.xlu0 %v1988_v21, %s2100_s2 }
  0x10   :  { %1832 = vmatpush3.bf16.msra.mxu0 %v85_v20  ;;  %1833 = vmatprep.mubr.msk.bf16.mxu0 %vm2098_vm0, %v2097_v0 }
  0x11   :  { %1843 = vmatprep.subr.bf16.mxu0 %v2052_v30 }
  0x12   :  { %311 = vperm.xlu1 %1987, %v43_v24  }
  0x13   :  { %306 = vperm.xlu0 %1986, %v42_v25  }
  0x16   :  { %321 = vperm.xlu1 %1987, %v45_v26  }
  0x17   :  { %1834 = vmatmul.mubr.msk.bf16.vlgmr.msra.gmra.mrb[8].mxu0 %vm92_vm1, %v2222_v23  ;;  %316 = vperm.xlu0 %1986, %v44_v27  }
  0x18   :  { %1844 = vmatpush3.bf16.msra.mxu0 %v2052_v30 }
  0x19   :  { %1865 = vmatprep.subr.bf16.mxu0 %v2097_v0 }
  0x1a   :  { %2004 = vrot.lane.b32.xlu1 %v2003_v28, %s2100_s2  ;;  %v377_v28 = vlaneseq }
  0x1b   :  { %1999 = vrot.lane.b32.xlu0 %v1998_v29, %s2100_s2 }
  0x1c   :  { %v2280_v29 = vshrl.u32 %v377_v28, 7 }
  0x1e   :  { %v379_v30 = vsub.s32 0, %v2280_v29 }
  0x83   :  { %v2242_v31 = vpop.permute.xlu1 %296 }
  0x85   :  { %v2246_v33 = vpop.permute.xlu0 %286 }
  0x89   :  { %v2244_v32 = vpop.permute.xlu1 %301 }
  0x8a   :  { %v2248_v35 = vpop.permute.xlu0 %291 }
  0x8d   :  { %v1995_v34 = vpop.permute.xlu1 %1994 }
  0x8e   :  { %v1990_v37 = vpop.permute.xlu0 %1989  ;;  %v1997_v2 = vunpack.i.h.bf16 %v1995_v34  ;;  %v1996_v3 = vunpack.i.l.bf16 %v1995_v34  ;;  %v2286_v34 = vld [vmem:[%s2603_s6] sm:$0xff] }
  0x8f   :  { %v1992_v44 = vunpack.i.h.bf16 %v1990_v37  ;;  %v1991_v45 = vunpack.i.l.bf16 %v1990_v37  ;;  %v466_v37 = vsub.s32 1, %v2280_v29 }
  0x91   :  { %v2250_v36 = vpop.permute.xlu1 %311 }
  0x92   :  { %v2254_v39 = vpop.permute.xlu0 %306 }
  0x95   :  { %v2252_v38 = vpop.permute.xlu1 %321 }
  0x96   :  { %v2256_v41 = vpop.permute.xlu0 %316 }
  0x99   :  { %v2005_v40 = vpop.permute.xlu1 %2004 }
  0x9a   :  { %v2006_v43 = vunpack.i.l.bf16 %v2005_v40  ;;  %v2007_v49 = vunpack.i.h.bf16 %v2005_v40  ;;  %v2000_v14 = vpop.permute.xlu0 %1999  ;;  %v380_v40 = vrot.slane %v2286_v34, %v379_v30 }
  0x9b   :  { %v2002_v16 = vunpack.i.h.bf16 %v2000_v14  ;;  %v2001_v18 = vunpack.i.l.bf16 %v2000_v14 }
  0xda   :  { %v130_v42 = vpop.f32.mrb[0].mxu0 }
  0xdb   :  { %v324_v46 = vmul.f32 %v2246_v33, %v130_v42  ;;  %v277_v47 = vpop.f32.mrb[0].mxu1  ;;  %v1823_v48 = vpop.f32.mrb[1].mxu0  ;;  %v478_v42 = vsub.s32 2, %v2280_v29 }
  0xdc   :  { %v330_v50 = vmul.f32 %v2256_v41, %v277_v47  ;;  %v1841_v51 = vpop.f32.mrb[1].mxu1  ;;  %v133_v52 = vpop.f32.mrb[2].mxu0 }
  0xdd   :  { %v325_v53 = vmul.f32 %v2248_v35, %v133_v52  ;;  %v280_v54 = vpop.f32.mrb[2].mxu1  ;;  %v1824_v55 = vpop.f32.mrb[3].mxu0  ;;  %v365_v59 = vsel %vm364_vm2, %v324_v46, %v1991_v45  ;;  %v479_v47 = vrot.slane %v2286_v34, %v478_v42  ;;  %v2053_v42 = vld [vmem:[%s2604_s4] sm:$0xff]  }
  0xde   :  { %v331_v56 = vmul.f32 %v2252_v38, %v280_v54  ;;  %v371_v57 = vsel %vm364_vm2, %v330_v50, %v2006_v43  ;;  %v1842_v58 = vpop.f32.mrb[3].mxu1 }
  0xdf   :  { %v366_v60 = vsel %vm364_vm2, %v325_v53, %v1992_v44  ;;  %v467_v44 = vrot.slane %v2286_v34, %v466_v37 }
  0xe0   :  { %v373_v61 = vpack.c.bf16 %v366_v60, %v365_v59  ;;  %v372_v62 = vsel %vm364_vm2, %v331_v56, %v2007_v49 }
  0xe1   :  { %v376_v63 = vpack.c.bf16 %v372_v62, %v371_v57 }
  0xe2   :  { %v179_v1 = vpop.f32.mrb[4].mxu0  ;;  %1845 = vmatprep.mubr.msk.bf16.mxu0 %vm92_vm1, %v373_v61 }
  0xe3   :  { %v326_v4 = vmul.f32 %v2242_v31, %v179_v1  ;;  %v1829_v5 = vpop.f32.mrb[5].mxu0 }
  0xe4   :  { %v182_v6 = vpop.f32.mrb[6].mxu0 }
  0xe5   :  { %v327_v8 = vmul.f32 %v2244_v32, %v182_v6  ;;  %v1830_v10 = vpop.f32.mrb[7].mxu0  ;;  %v367_v11 = vsel %vm364_vm2, %v326_v4, %v1996_v3 }
  0xe7   :  { %v368_v12 = vsel %vm364_vm2, %v327_v8, %v1997_v2 }
  0xe8   :  { %v374_v13 = vpack.c.bf16 %v368_v12, %v367_v11 }
  0xea   :  { %v228_v15 = vpop.f32.mrb[8].mxu0  ;;  %1846 = vmatmul.mubr.msk.bf16.vlgmr.msra.gmra.mrb[12].mxu0 %vm92_vm1, %v374_v13 }
  0xeb   :  { %v328_v19 = vmul.f32 %v2254_v39, %v228_v15  ;;  %v1835_v20 = vpop.f32.mrb[9].mxu0 }
  0xec   :  { %v231_v21 = vpop.f32.mrb[10].mxu0 }
  0xed   :  { %v329_v22 = vmul.f32 %v2250_v36, %v231_v21  ;;  %v1836_v24 = vpop.f32.mrb[11].mxu0  ;;  %v369_v25 = vsel %vm364_vm2, %v328_v19, %v2001_v18 }
  0xef   :  { %v370_v26 = vsel %vm364_vm2, %v329_v22, %v2002_v16 }
  0xf0   :  { %v375_v27 = vpack.c.bf16 %v370_v26, %v369_v25 }
  0xf2   :  { %1849 = vmatprep.mubr.msk.bf16.mxu0 %vm92_vm1, %v375_v27 }
  0xf3   :  { %1850 = vmatmul.mubr.msk.bf16.gmra.mrb[16].mxu0 %vm92_vm1, %v376_v63 }
  0xf4   :  { %1867 = vmatprep.mubr.msk.bf16.mxu0 %vm2098_vm0, %v2097_v0 }
 0x1bd   :  { %v1847_v43 = vpop.f32.mrb[12].mxu0 }
 0x1be   :  { %v433_v45 = vpop.f32.mrb[13].mxu0  ;;  %v442_v46 = vadd.f32 %v1847_v43, %v380_v40  ;;  %v2054_v43 = vld [vmem:[%s2604_s4 + $0x8] sm:$0xff]  }
 0x1bf   :  { %v434_v48 = vadd.f32 %v433_v45, %v380_v40  ;;  %v1848_v49 = vpop.f32.mrb[14].mxu0 }
 0x1c0   :  { %v445_v50 = vadd.f32 %v1848_v49, %v380_v40  ;;  %v436_v51 = vpop.f32.mrb[15].mxu0  ;;  %v470_v55 = vmul.f32 %v467_v44, %v442_v46 }
 0x1c1   :  { %v468_v52 = vmul.f32 %v467_v44, %v434_v48  ;;  %v437_v53 = vadd.f32 %v436_v51, %v380_v40 }
 0x1c2   :  { %v471_v54 = vmul.f32 %v467_v44, %v445_v50  ;;  %v482_v61 = vadd.f32 %v479_v47, %v470_v55 }
 0x1c3   :  { %v480_v56 = vadd.f32 %v479_v47, %v468_v52  ;;  %v469_v57 = vmul.f32 %v467_v44, %v437_v53 }
 0x1c4   :  { %v483_v58 = vadd.f32 %v479_v47, %v471_v54  ;;  %v2305_v13 = vmax.f32 %v482_v61, 0.0 }
 0x1c5   :  { %v481_v59 = vadd.f32 %v479_v47, %v469_v57  ;;  %v2297_v62 = vmax.f32 %v480_v56, 0.0 }
 0x1c6   :  { %v1851_v60 = vpop.f32.mrb[16].mxu0  ;;  %v2301_v5 = vmax.f32 %v483_v58, 0.0 }
 0x1c7   :  { %v2299_v63 = vmax.f32 %v481_v59, 0.0  ;;  %v458_v1 = vadd.f32 %v1851_v60, %v380_v40  ;;  %v449_v2 = vpop.f32.mrb[17].mxu0 }
 0x1c8   :  { %v450_v3 = vadd.f32 %v449_v2, %v380_v40  ;;  %v1852_v4 = vpop.f32.mrb[18].mxu0  ;;  %v497_v20 = vpack.c.bf16 %v2301_v5, %v2305_v13 }
 0x1c9   :  { %v461_v6 = vadd.f32 %v1852_v4, %v380_v40  ;;  %v452_v8 = vpop.f32.mrb[19].mxu0  ;;  %v496_v10 = vpack.c.bf16 %v2299_v63, %v2297_v62  ;;  %v474_v14 = vmul.f32 %v467_v44, %v458_v1 }
 0x1ca   :  { %v472_v11 = vmul.f32 %v467_v44, %v450_v3  ;;  %v453_v12 = vadd.f32 %v452_v8, %v380_v40 }
 0x1cb   :  { %v475_v15 = vmul.f32 %v467_v44, %v461_v6  ;;  %1854 = vmatpush3.bf16.msra.mxu1 %v496_v10  ;;  %v486_v22 = vadd.f32 %v479_v47, %v474_v14 }
 0x1cc   :  { %v484_v16 = vadd.f32 %v479_v47, %v472_v11  ;;  %v473_v18 = vmul.f32 %v467_v44, %v453_v12  ;;  %1859 = vmatprep.subr.bf16.mxu1 %v2097_v0 }
 0x1cd   :  { %v487_v19 = vadd.f32 %v479_v47, %v475_v15  ;;  %v2323_v28 = vmax.f32 %v486_v22, 0.0  ;;  %v2055_v15 = vld [vmem:[%s2604_s4 + $0x10] sm:$0xff]  }
 0x1ce   :  { %v485_v21 = vadd.f32 %v479_v47, %v473_v18  ;;  %1856 = vmatmul.mubr.msk.bf16.vlgmr.msra.gmra.mrb[4].mxu1 %vm92_vm1, %v2168_v7  ;;  %v2314_v24 = vmax.f32 %v484_v16, 0.0  ;;  %v2056_v16 = vld [vmem:[%s2604_s4 + $0x18] sm:$0xff]   ;;  %v678_v18 = vsub.s32 3, %v2280_v29 }
 0x1cf   :  { %1860 = vmatpush3.bf16.msra.mxu1 %v497_v20  ;;  %1861 = vmatprep.mubr.msk.bf16.mxu1 %vm2098_vm0, %v2097_v0  ;;  %v2319_v26 = vmax.f32 %v487_v19, 0.0 }
 0x1d0   :  { %v2316_v25 = vmax.f32 %v485_v21, 0.0  ;;  %1871 = vmatprep.subr.bf16.mxu1 %v2097_v0  ;;  %v679_v19 = vrot.slane %v2286_v34, %v678_v18 }
 0x1d1   :  { %v499_v40 = vpack.c.bf16 %v2319_v26, %v2323_v28 }
 0x1d2   :  { %v498_v27 = vpack.c.bf16 %v2316_v25, %v2314_v24 }
 0x1d4   :  { %1866 = vmatpush3.bf16.msra.mxu0 %v498_v27 }
 0x1d5   :  { %1877 = vmatprep.subr.bf16.mxu0 %v2053_v42 }
 0x1d6   :  { %1862 = vmatmul.mubr.msk.bf16.vlgmr.msra.gmra.mrb[8].mxu1 %vm92_vm1, %v2205_v17 }
 0x1d7   :  { %1872 = vmatpush3.bf16.msra.mxu1 %v499_v40  ;;  %1868 = vmatmul.mubr.msk.bf16.vlgmr.msra.gmra.mrb[20].mxu0 %vm92_vm1, %v2222_v23 }
 0x1d8   :  { %1873 = vmatprep.mubr.msk.bf16.mxu1 %vm2098_vm0, %v2097_v0  ;;  %1878 = vmatpush3.bf16.msra.mxu0 %v2053_v42 }
 0x1d9   :  { %1879 = vmatprep.subr.bf16.mxu0 %v2054_v43  ;;  %1889 = vmatprep.subr.bf16.mxu1 %v2055_v15 }
 0x1dc   :  { %1880 = vmatpush3.bf16.msra.mxu0 %v2054_v43 }
 0x1dd   :  { %1901 = vmatprep.subr.bf16.mxu0 %v2097_v0 }
 0x1de   :  { %1874 = vmatmul.mubr.msk.bf16.vlgmr.msra.gmra.mrb[12].mxu1 %vm92_vm1, %v2173_v9 }
 0x1df   :  { %1890 = vmatpush3.bf16.msra.mxu1 %v2055_v15 }
 0x1e0   :  { %1891 = vmatprep.subr.bf16.mxu1 %v2056_v16 }
 0x1e3   :  { %1892 = vmatpush3.bf16.msra.mxu1 %v2056_v16 }
 0x1e4   :  { %1907 = vmatprep.subr.bf16.mxu1 %v2097_v0 }
 0x2a1   :  { %v534_v44 = vpop.f32.mrb[4].mxu1 }
 0x2a2   :  { %v1857_v45 = vpop.f32.mrb[5].mxu1  ;;  %v664_v47 = vadd.f32 %v534_v44, %v2297_v62 }
 0x2a3   :  { %v537_v46 = vpop.f32.mrb[6].mxu1 }
 0x2a4   :  { %v665_v48 = vadd.f32 %v537_v46, %v2299_v63  ;;  %v1858_v49 = vpop.f32.mrb[7].mxu1 }
 0x2a6   :  { %v672_v50 = vpack.c.bf16 %v665_v48, %v664_v47 }
 0x2a8   :  { %1881 = vmatprep.mubr.msk.bf16.mxu0 %vm692_vm3, %v672_v50 }
 0x2a9   :  { %v575_v51 = vpop.f32.mrb[8].mxu1 }
 0x2aa   :  { %v1863_v52 = vpop.f32.mrb[9].mxu1  ;;  %v616_v53 = vpop.f32.mrb[20].mxu0  ;;  %v666_v56 = vadd.f32 %v575_v51, %v2305_v13 }
 0x2ab   :  { %v578_v54 = vpop.f32.mrb[10].mxu1  ;;  %v1869_v55 = vpop.f32.mrb[21].mxu0  ;;  %v668_v60 = vadd.f32 %v616_v53, %v2314_v24 }
 0x2ac   :  { %v667_v57 = vadd.f32 %v578_v54, %v2301_v5  ;;  %v1864_v58 = vpop.f32.mrb[11].mxu1  ;;  %v619_v59 = vpop.f32.mrb[22].mxu0 }
 0x2ad   :  { %v669_v61 = vadd.f32 %v619_v59, %v2316_v25  ;;  %v1870_v1 = vpop.f32.mrb[23].mxu0 }
 0x2ae   :  { %v673_v2 = vpack.c.bf16 %v667_v57, %v666_v56 }
 0x2af   :  { %v674_v3 = vpack.c.bf16 %v669_v61, %v668_v60 }
 0x2b0   :  { %1882 = vmatmul.mubr.msk.bf16.vlgmr.msra.gmra.mrb[24].mxu0 %vm692_vm3, %v673_v2 }
 0x2b1   :  { %v657_v4 = vpop.f32.mrb[12].mxu1  ;;  %1885 = vmatprep.mubr.msk.bf16.mxu0 %vm692_vm3, %v674_v3 }
 0x2b2   :  { %v1875_v6 = vpop.f32.mrb[13].mxu1  ;;  %v670_v10 = vadd.f32 %v657_v4, %v2323_v28  ;;  %v784_v4 = vsub.s32 4, %v2280_v29 }
 0x2b3   :  { %v660_v8 = vpop.f32.mrb[14].mxu1  ;;  %v877_v6 = vsub.s32 5, %v2280_v29 }
 0x2b4   :  { %v671_v11 = vadd.f32 %v660_v8, %v2319_v26  ;;  %v1876_v12 = vpop.f32.mrb[15].mxu1  ;;  %v785_v8 = vrot.slane %v2286_v34, %v784_v4 }
 0x2b6   :  { %v675_v14 = vpack.c.bf16 %v671_v11, %v670_v10  ;;  %v889_v10 = vsub.s32 6, %v2280_v29  ;;  %v878_v11 = vrot.slane %v2286_v34, %v877_v6 }
 0x2b8   :  { %1886 = vmatmul.mubr.msk.bf16.gmra.mrb[28].mxu0 %vm692_vm3, %v675_v14  ;;  %v890_v15 = vrot.slane %v2286_v34, %v889_v10 }
 0x2b9   :  { %1903 = vmatprep.mubr.msk.bf16.mxu0 %vm2098_vm0, %v2097_v0 }
 0x383   :  { %v1883_v20 = vpop.f32.mrb[24].mxu0 }
 0x384   :  { %v748_v21 = vadd.f32 %v1883_v20, %v679_v19  ;;  %v739_v22 = vpop.f32.mrb[25].mxu0 }
 0x385   :  { %v740_v27 = vadd.f32 %v739_v22, %v679_v19  ;;  %v1884_v40 = vpop.f32.mrb[26].mxu0 }
 0x386   :  { %v751_v42 = vadd.f32 %v1884_v40, %v679_v19  ;;  %v742_v43 = vpop.f32.mrb[27].mxu0  ;;  %v772_v45 = vmax.f32 %v748_v21, 0.0 }
 0x387   :  { %v743_v44 = vadd.f32 %v742_v43, %v679_v19  ;;  %v770_v47 = vmax.f32 %v740_v27, 0.0 }
 0x388   :  { %v773_v46 = vmax.f32 %v751_v42, 0.0 }
 0x389   :  { %v771_v48 = vmax.f32 %v743_v44, 0.0 }
 0x38a   :  { %v779_v49 = vpack.c.bf16 %v773_v46, %v772_v45 }
 0x38b   :  { %v778_v50 = vpack.c.bf16 %v771_v48, %v770_v47  ;;  %v1887_v51 = vpop.f32.mrb[28].mxu0 }
 0x38c   :  { %v764_v52 = vadd.f32 %v1887_v51, %v679_v19  ;;  %v755_v53 = vpop.f32.mrb[29].mxu0 }
 0x38d   :  { %v756_v54 = vadd.f32 %v755_v53, %v679_v19  ;;  %v1888_v55 = vpop.f32.mrb[30].mxu0  ;;  %1893 = vmatprep.mubr.msk.bf16.mxu1 %vm692_vm3, %v778_v50 }
 0x38e   :  { %v767_v56 = vadd.f32 %v1888_v55, %v679_v19  ;;  %v758_v57 = vpop.f32.mrb[31].mxu0  ;;  %1894 = vmatmul.mubr.msk.bf16.vlgmr.msra.gmra.mrb[16].mxu1 %vm692_vm3, %v779_v49  ;;  %v776_v59 = vmax.f32 %v764_v52, 0.0 }
 0x38f   :  { %v759_v58 = vadd.f32 %v758_v57, %v679_v19  ;;  %v774_v61 = vmax.f32 %v756_v54, 0.0 }
 0x390   :  { %v777_v60 = vmax.f32 %v767_v56, 0.0 }
 0x391   :  { %v775_v1 = vmax.f32 %v759_v58, 0.0 }
 0x392   :  { %v781_v2 = vpack.c.bf16 %v777_v60, %v776_v59 }
 0x393   :  { %v780_v3 = vpack.c.bf16 %v775_v1, %v774_v61 }
 0x395   :  { %1897 = vmatprep.mubr.msk.bf16.mxu1 %vm692_vm3, %v780_v3 }
 0x396   :  { %1898 = vmatmul.mubr.msk.bf16.gmra.mrb[20].mxu1 %vm692_vm3, %v781_v2 }
 0x397   :  { %1909 = vmatprep.mubr.msk.bf16.mxu1 %vm2098_vm0, %v2097_v0 }
 0x461   :  { %v1895_v12 = vpop.f32.mrb[16].mxu1 }
 0x462   :  { %v853_v14 = vadd.f32 %v1895_v12, %v785_v8  ;;  %v844_v16 = vpop.f32.mrb[17].mxu1 }
 0x463   :  { %v845_v18 = vadd.f32 %v844_v16, %v785_v8  ;;  %v1896_v19 = vpop.f32.mrb[18].mxu1 }
 0x464   :  { %v881_v20 = vmul.f32 %v878_v11, %v853_v14  ;;  %v856_v21 = vadd.f32 %v1896_v19, %v785_v8  ;;  %v847_v22 = vpop.f32.mrb[19].mxu1 }
 0x465   :  { %v879_v27 = vmul.f32 %v878_v11, %v845_v18  ;;  %v848_v40 = vadd.f32 %v847_v22, %v785_v8 }
 0x466   :  { %v893_v42 = vadd.f32 %v890_v15, %v881_v20  ;;  %v882_v43 = vmul.f32 %v878_v11, %v856_v21 }
 0x467   :  { %v891_v44 = vadd.f32 %v890_v15, %v879_v27  ;;  %v880_v45 = vmul.f32 %v878_v11, %v848_v40  ;;  %v2057_v40 = vld [vmem:[%s2604_s4 + $0x20] sm:$0xff]  }
 0x468   :  { %v901_v46 = vmax.f32 %v893_v42, 0.0  ;;  %v894_v47 = vadd.f32 %v890_v15, %v882_v43  ;;  %v2058_v42 = vld [vmem:[%s2604_s4 + $0x28] sm:$0xff]   ;;  %v2059_v43 = vld [vmem:[%s2604_s4 + $0x30] sm:$0xff]  }
 0x469   :  { %v899_v48 = vmax.f32 %v891_v44, 0.0  ;;  %v892_v49 = vadd.f32 %v890_v15, %v880_v45  ;;  %v1899_v50 = vpop.f32.mrb[20].mxu1  ;;  %v2060_v44 = vld [vmem:[%s2604_s4 + $0x38] sm:$0xff]  }
 0x46a   :  { %v902_v51 = vmax.f32 %v894_v47, 0.0  ;;  %v869_v52 = vadd.f32 %v1899_v50, %v785_v8  ;;  %v860_v53 = vpop.f32.mrb[21].mxu1  ;;  %v2378_v57 = vadd.f32 %v901_v46, %v2305_v13 }
 0x46b   :  { %v900_v54 = vmax.f32 %v892_v49, 0.0  ;;  %v861_v55 = vadd.f32 %v860_v53, %v785_v8  ;;  %v1900_v56 = vpop.f32.mrb[22].mxu1  ;;  %v2384_v1 = vadd.f32 %v899_v48, %v2297_v62 }
 0x46c   :  { %v2381_v58 = vadd.f32 %v902_v51, %v2301_v5  ;;  %v885_v59 = vmul.f32 %v878_v11, %v869_v52  ;;  %v872_v60 = vadd.f32 %v1900_v56, %v785_v8  ;;  %v863_v61 = vpop.f32.mrb[23].mxu1 }
 0x46d   :  { %v2387_v2 = vadd.f32 %v900_v54, %v2299_v63  ;;  %v883_v3 = vmul.f32 %v878_v11, %v861_v55  ;;  %v864_v4 = vadd.f32 %v863_v61, %v785_v8 }
 0x46e   :  { %v897_v6 = vadd.f32 %v890_v15, %v885_v59  ;;  %v886_v10 = vmul.f32 %v878_v11, %v872_v60  ;;  %v2013_v13 = vpack.i.bf16 %v2381_v58, %v2378_v57  ;;  %v916_v5 = vpack.c.bf16 %v2381_v58, %v2378_v57 }
 0x46f   :  { %v895_v12 = vadd.f32 %v890_v15, %v883_v3  ;;  %v884_v14 = vmul.f32 %v878_v11, %v864_v4  ;;  %v2008_v16 = vpack.i.bf16 %v2387_v2, %v2384_v1  ;;  %v915_v62 = vpack.c.bf16 %v2387_v2, %v2384_v1 }
 0x470   :  { %v905_v63 = vmax.f32 %v897_v6, 0.0  ;;  %v898_v18 = vadd.f32 %v890_v15, %v886_v10  ;;  %2014 = vrot.lane.b32.xlu1 %v2013_v13, %s2101_s10  ;;  %1908 = vmatpush3.bf16.msra.mxu1 %v916_v5 }
 0x471   :  { %v903_v8 = vmax.f32 %v895_v12, 0.0  ;;  %v896_v19 = vadd.f32 %v890_v15, %v884_v14  ;;  %2009 = vrot.lane.b32.xlu0 %v2008_v16, %s2101_s10  ;;  %1902 = vmatpush3.bf16.msra.mxu0 %v915_v62 }
 0x472   :  { %v906_v20 = vmax.f32 %v898_v18, 0.0  ;;  %1919 = vmatprep.subr.bf16.mxu1 %v2097_v0  ;;  %1913 = vmatprep.subr.bf16.mxu0 %v2097_v0  ;;  %v2404_v21 = vadd.f32 %v905_v63, %v2323_v28 }
 0x473   :  { %v904_v11 = vmax.f32 %v896_v19, 0.0  ;;  %1910 = vmatmul.mubr.msk.bf16.vlgmr.msra.gmra.mrb[24].mxu1 %vm92_vm1, %v2205_v17  ;;  %v2414_v15 = vadd.f32 %v903_v8, %v2314_v24 }
 0x474   :  { %v2407_v22 = vadd.f32 %v906_v20, %v2319_v26  ;;  %1904 = vmatmul.mubr.msk.bf16.vlgmr.msra.gmra.mrb[32].mxu0 %vm92_vm1, %v2168_v7  ;;  %1921 = vmatprep.mubr.msk.bf16.mxu1 %vm2098_vm0, %v2097_v0 }
 0x475   :  { %v2417_v27 = vadd.f32 %v904_v11, %v2316_v25  ;;  %1915 = vmatprep.mubr.msk.bf16.mxu0 %vm2098_vm0, %v2097_v0 }
 0x476   :  { %v2023_v28 = vpack.i.bf16 %v2407_v22, %v2404_v21  ;;  %v918_v26 = vpack.c.bf16 %v2407_v22, %v2404_v21 }
 0x477   :  { %v2018_v24 = vpack.i.bf16 %v2417_v27, %v2414_v15  ;;  %v917_v25 = vpack.c.bf16 %v2417_v27, %v2414_v15 }
 0x478   :  { %2024 = vrot.lane.b32.xlu1 %v2023_v28, %s2101_s10  ;;  %1920 = vmatpush3.bf16.msra.mxu1 %v918_v26 }
 0x479   :  { %2019 = vrot.lane.b32.xlu0 %v2018_v24, %s2101_s10  ;;  %1914 = vmatpush3.bf16.msra.mxu0 %v917_v25 }
 0x47a   :  { %1925 = vmatprep.subr.bf16.mxu0 %v2057_v40  ;;  %1941 = vmatprep.subr.bf16.mxu1 %v2097_v0 }
 0x47b   :  { %1922 = vmatmul.mubr.msk.bf16.vlgmr.msra.gmra.mrb[28].mxu1 %vm92_vm1, %v2173_v9 }
 0x47c   :  { %1916 = vmatmul.mubr.msk.bf16.vlgmr.msra.gmra.mrb[36].mxu0 %vm92_vm1, %v2222_v23  ;;  %1943 = vmatprep.mubr.msk.bf16.mxu1 %vm2098_vm0, %v2097_v0 }
 0x47d   :  { %1926 = vmatpush3.bf16.msra.mxu0 %v2057_v40 }
 0x47e   :  { %1927 = vmatprep.subr.bf16.mxu0 %v2058_v42 }
 0x481   :  { %1928 = vmatpush3.bf16.msra.mxu0 %v2058_v42 }
 0x482   :  { %1929 = vmatprep.subr.bf16.mxu0 %v2059_v43 }
 0x485   :  { %1930 = vmatpush3.bf16.msra.mxu0 %v2059_v43 }
 0x486   :  { %1931 = vmatprep.subr.bf16.mxu0 %v2060_v44 }
 0x489   :  { %1932 = vmatpush3.bf16.msra.mxu0 %v2060_v44 }
 0x48a   :  { %1959 = vmatprep.subr.bf16.mxu0 %v2097_v0 }
 0x4e2   :  { %v2015_v45 = vpop.permute.xlu1 %2014 }
 0x4e3   :  { %v2010_v46 = vpop.permute.xlu0 %2009  ;;  %v2017_v54 = vunpack.i.h.bf16 %v2015_v45  ;;  %v2016_v55 = vunpack.i.l.bf16 %v2015_v45 }
 0x4e4   :  { %v2012_v61 = vunpack.i.h.bf16 %v2010_v46  ;;  %v2011_v3 = vunpack.i.l.bf16 %v2010_v46 }
 0x4ea   :  { %v2025_v16 = vpop.permute.xlu1 %2024 }
 0x4eb   :  { %v2020_v63 = vpop.permute.xlu0 %2019  ;;  %v2027_v40 = vunpack.i.h.bf16 %v2025_v16  ;;  %v2026_v24 = vunpack.i.l.bf16 %v2025_v16 }
 0x4ec   :  { %v2022_v44 = vunpack.i.h.bf16 %v2020_v63  ;;  %v2021_v45 = vunpack.i.l.bf16 %v2020_v63 }
 0x546   :  { %v994_v47 = vpop.f32.mrb[24].mxu1 }
 0x547   :  { %v1085_v48 = vmul.f32 %v994_v47, %v2242_v31  ;;  %v953_v49 = vpop.f32.mrb[32].mxu0  ;;  %v1911_v50 = vpop.f32.mrb[25].mxu1 }
 0x548   :  { %v1083_v51 = vmul.f32 %v953_v49, %v2246_v33  ;;  %v1905_v52 = vpop.f32.mrb[33].mxu0  ;;  %v997_v53 = vpop.f32.mrb[26].mxu1 }
 0x549   :  { %v1086_v56 = vmul.f32 %v997_v53, %v2244_v32  ;;  %v956_v59 = vpop.f32.mrb[34].mxu0  ;;  %v1912_v60 = vpop.f32.mrb[27].mxu1  ;;  %v1125_v10 = vsel %vm692_vm3, %v1085_v48, %v2016_v55  ;;  %v55_v55 = vld [vmem:[%s2603_s6 + $0x8] sm:$0x3] }
 0x54a   :  { %v1084_v4 = vmul.f32 %v956_v59, %v2248_v35  ;;  %v1906_v6 = vpop.f32.mrb[35].mxu0  ;;  %v1123_v5 = vsel %vm692_vm3, %v1083_v51, %v2011_v3  ;;  %v1244_v59 = vrot.slane %v55_v55, %v379_v30  ;;  %v1256_v3 = vrot.slane %v55_v55, %v466_v37 }
 0x54b   :  { %v1126_v13 = vsel %vm692_vm3, %v1086_v56, %v2017_v54  ;;  %v1137_v54 = vsub.s32 7, %v2280_v29 }
 0x54c   :  { %v1132_v12 = vpack.c.bf16 %v1126_v13, %v1125_v10  ;;  %v1124_v14 = vsel %vm692_vm3, %v1084_v4, %v2012_v61 }
 0x54d   :  { %v1131_v62 = vpack.c.bf16 %v1124_v14, %v1123_v5  ;;  %v1138_v56 = vrot.slane %v2286_v34, %v1137_v54 }
 0x54e   :  { %v1076_v18 = vpop.f32.mrb[28].mxu1 }
 0x54f   :  { %v1089_v8 = vmul.f32 %v1076_v18, %v2256_v41  ;;  %v1035_v19 = vpop.f32.mrb[36].mxu0  ;;  %v1923_v20 = vpop.f32.mrb[29].mxu1  ;;  %1933 = vmatprep.mubr.msk.bf16.mxu0 %vm1163_vm4, %v1131_v62 }
 0x550   :  { %v1087_v11 = vmul.f32 %v1035_v19, %v2254_v39  ;;  %v1917_v28 = vpop.f32.mrb[37].mxu0  ;;  %v1079_v26 = vpop.f32.mrb[30].mxu1  ;;  %1934 = vmatmul.mubr.msk.bf16.vlgmr.msra.gmra.mrb[40].mxu0 %vm1163_vm4, %v1132_v12 }
 0x551   :  { %v1090_v25 = vmul.f32 %v1079_v26, %v2252_v38  ;;  %v1038_v42 = vpop.f32.mrb[38].mxu0  ;;  %v1924_v43 = vpop.f32.mrb[31].mxu1  ;;  %v1129_v48 = vsel %vm692_vm3, %v1089_v8, %v2026_v24 }
 0x552   :  { %v1088_v46 = vmul.f32 %v1038_v42, %v2250_v36  ;;  %v1918_v47 = vpop.f32.mrb[39].mxu0  ;;  %v1127_v50 = vsel %vm692_vm3, %v1087_v11, %v2021_v45 }
 0x553   :  { %v1130_v49 = vsel %vm692_vm3, %v1090_v25, %v2027_v40 }
 0x554   :  { %v1134_v51 = vpack.c.bf16 %v1130_v49, %v1129_v48  ;;  %v1128_v52 = vsel %vm692_vm3, %v1088_v46, %v2022_v44 }
 0x555   :  { %v1133_v53 = vpack.c.bf16 %v1128_v52, %v1127_v50 }
 0x557   :  { %1937 = vmatprep.mubr.msk.bf16.mxu0 %vm1163_vm4, %v1133_v53 }
 0x558   :  { %1938 = vmatmul.mubr.msk.bf16.gmra.mrb[44].mxu0 %vm1163_vm4, %v1134_v51 }
 0x559   :  { %1961 = vmatprep.mubr.msk.bf16.mxu0 %vm2098_vm0, %v2097_v0 }
 0x623   :  { %v1935_v60 = vpop.f32.mrb[40].mxu0 }
 0x624   :  { %v1219_v61 = vadd.f32 %v1935_v60, %v1138_v56  ;;  %v1210_v4 = vpop.f32.mrb[41].mxu0 }
 0x625   :  { %v1211_v6 = vadd.f32 %v1210_v4, %v1138_v56  ;;  %v1936_v10 = vpop.f32.mrb[42].mxu0 }
 0x626   :  { %v1247_v13 = vmul.f32 %v1244_v59, %v1219_v61  ;;  %v1222_v5 = vadd.f32 %v1936_v10, %v1138_v56  ;;  %v1213_v12 = vpop.f32.mrb[43].mxu0 }
 0x627   :  { %v1245_v14 = vmul.f32 %v1244_v59, %v1211_v6  ;;  %v1214_v16 = vadd.f32 %v1213_v12, %v1138_v56 }
 0x628   :  { %v1259_v62 = vadd.f32 %v1256_v3, %v1247_v13  ;;  %v1248_v63 = vmul.f32 %v1244_v59, %v1222_v5 }
 0x629   :  { %v1257_v18 = vadd.f32 %v1256_v3, %v1245_v14  ;;  %v1246_v34 = vmul.f32 %v1244_v59, %v1214_v16 }
 0x62a   :  { %v1267_v8 = vmax.f32 %v1259_v62, 0.0  ;;  %v1260_v19 = vadd.f32 %v1256_v3, %v1248_v63 }
 0x62b   :  { %v1265_v30 = vmax.f32 %v1257_v18, 0.0  ;;  %v1258_v20 = vadd.f32 %v1256_v3, %v1246_v34  ;;  %v1939_v11 = vpop.f32.mrb[44].mxu0 }
 0x62c   :  { %v1268_v28 = vmax.f32 %v1260_v19, 0.0  ;;  %v1235_v29 = vadd.f32 %v1939_v11, %v1138_v56  ;;  %v1226_v37 = vpop.f32.mrb[45].mxu0  ;;  %v1275_v44 = vadd.f32 %v1267_v8, %v2378_v57 }
 0x62d   :  { %v1266_v26 = vmax.f32 %v1258_v20, 0.0  ;;  %v1227_v40 = vadd.f32 %v1226_v37, %v1138_v56  ;;  %v1940_v24 = vpop.f32.mrb[46].mxu0  ;;  %v1273_v48 = vadd.f32 %v1265_v30, %v2384_v1 }
 0x62e   :  { %v1251_v25 = vmul.f32 %v1244_v59, %v1235_v29  ;;  %v1238_v42 = vadd.f32 %v1940_v24, %v1138_v56  ;;  %v1229_v43 = vpop.f32.mrb[47].mxu0  ;;  %v1276_v45 = vadd.f32 %v1268_v28, %v2381_v58 }
 0x62f   :  { %v1249_v46 = vmul.f32 %v1244_v59, %v1227_v40  ;;  %v1230_v47 = vadd.f32 %v1229_v43, %v1138_v56  ;;  %v1274_v49 = vadd.f32 %v1266_v26, %v2387_v2 }
 0x630   :  { %v1263_v50 = vadd.f32 %v1256_v3, %v1251_v25  ;;  %v1252_v51 = vmul.f32 %v1244_v59, %v1238_v42  ;;  %v2033_v52 = vpack.i.bf16 %v1276_v45, %v1275_v44  ;;  %v1282_v53 = vpack.c.bf16 %v1276_v45, %v1275_v44 }
 0x631   :  { %v1261_v54 = vadd.f32 %v1256_v3, %v1249_v46  ;;  %v1250_v55 = vmul.f32 %v1244_v59, %v1230_v47  ;;  %v2028_v60 = vpack.i.bf16 %v1274_v49, %v1273_v48  ;;  %v1281_v61 = vpack.c.bf16 %v1274_v49, %v1273_v48 }
 0x632   :  { %v1271_v4 = vmax.f32 %v1263_v50, 0.0  ;;  %v1264_v6 = vadd.f32 %v1256_v3, %v1252_v51  ;;  %2034 = vrot.lane.b32.xlu1 %v2033_v52, %s2101_s10 }
 0x633   :  { %v1269_v57 = vmax.f32 %v1261_v54, 0.0  ;;  %v1262_v58 = vadd.f32 %v1256_v3, %v1250_v55  ;;  %2029 = vrot.lane.b32.xlu0 %v2028_v60, %s2101_s10  ;;  %1942 = vmatpush3.bf16.msra.mxu1 %v1281_v61 }
 0x634   :  { %v1272_v1 = vmax.f32 %v1264_v6, 0.0  ;;  %1947 = vmatprep.subr.bf16.mxu1 %v2097_v0  ;;  %v1279_v56 = vadd.f32 %v1271_v4, %v2404_v21 }
 0x635   :  { %v1270_v2 = vmax.f32 %v1262_v58, 0.0  ;;  %v1277_v10 = vadd.f32 %v1269_v57, %v2414_v15 }
 0x636   :  { %1944 = vmatmul.mubr.msk.bf16.vlgmr.msra.gmra.mrb[32].mxu1 %vm92_vm1, %v2168_v7  ;;  %v1280_v59 = vadd.f32 %v1272_v1, %v2407_v22  ;;  %v2061_v7 = vld [vmem:[%s2605_s5] sm:$0xff]  }
 0x637   :  { %1948 = vmatpush3.bf16.msra.mxu1 %v1282_v53  ;;  %v1278_v13 = vadd.f32 %v1270_v2, %v2417_v27  ;;  %1949 = vmatprep.mubr.msk.bf16.mxu1 %vm2098_vm0, %v2097_v0 }
 0x638   :  { %v2043_v3 = vpack.i.bf16 %v1280_v59, %v1279_v56  ;;  %v1284_v5 = vpack.c.bf16 %v1280_v59, %v1279_v56  ;;  %1953 = vmatprep.subr.bf16.mxu1 %v2097_v0 }
 0x639   :  { %v2038_v12 = vpack.i.bf16 %v1278_v13, %v1277_v10  ;;  %v1283_v14 = vpack.c.bf16 %v1278_v13, %v1277_v10 }
 0x63a   :  { %2044 = vrot.lane.b32.xlu1 %v2043_v3, %s2101_s10  ;;  %1960 = vmatpush3.bf16.msra.mxu0 %v1284_v5 }
 0x63b   :  { %2039 = vrot.lane.b32.xlu0 %v2038_v12, %s2101_s10 }
 0x63d   :  { %1962 = vmatmul.mubr.msk.bf16.vlgmr.msra.gmra.mrb[48].mxu0 %vm92_vm1, %v2173_v9  ;;  %v2062_v9 = vld [vmem:[%s2605_s5 + $0x8] sm:$0xff]  }
 0x63e   :  { %1950 = vmatmul.mubr.msk.bf16.vlgmr.msra.gmra.mrb[36].mxu1 %vm92_vm1, %v2205_v17  ;;  %v2063_v17 = vld [vmem:[%s2605_s5 + $0x10] sm:$0xff]  }
 0x63f   :  { %1954 = vmatpush3.bf16.msra.mxu1 %v1283_v14  ;;  %1955 = vmatprep.mubr.msk.bf16.mxu1 %vm2098_vm0, %v2097_v0  ;;  %v2064_v0 = vld [vmem:[%s2605_s5 + $0x18] sm:$0xff]  }
 0x640   :  { %1965 = vmatprep.subr.bf16.mxu1 %v2061_v7 }
 0x646   :  { %1956 = vmatmul.mubr.msk.bf16.vlgmr.msra.gmra.mrb[40].mxu1 %vm92_vm1, %v2222_v23 }
 0x647   :  { %1966 = vmatpush3.bf16.msra.mxu1 %v2061_v7 }
 0x648   :  { %1967 = vmatprep.subr.bf16.mxu1 %v2062_v9 }
 0x64b   :  { %1968 = vmatpush3.bf16.msra.mxu1 %v2062_v9 }
 0x64c   :  { %1969 = vmatprep.subr.bf16.mxu1 %v2063_v17 }
 0x64f   :  { %1970 = vmatpush3.bf16.msra.mxu1 %v2063_v17 }
 0x650   :  { %1971 = vmatprep.subr.bf16.mxu1 %v2064_v0 }
 0x653   :  { %1972 = vmatpush3.bf16.msra.mxu1 %v2064_v0 }
 0x6a4   :  { %v2035_v16 = vpop.permute.xlu1 %2034 }
 0x6a5   :  { %v2030_v23 = vpop.permute.xlu0 %2029  ;;  %v2037_v44 = vunpack.i.h.bf16 %v2035_v16  ;;  %v2036_v45 = vunpack.i.l.bf16 %v2035_v16 }
 0x6a6   :  { %v2032_v62 = vunpack.i.h.bf16 %v2030_v23  ;;  %v2031_v63 = vunpack.i.l.bf16 %v2030_v23 }
 0x6ac   :  { %v2045_v20 = vpop.permute.xlu1 %2044 }
 0x6ad   :  { %v2047_v24 = vunpack.i.h.bf16 %v2045_v20  ;;  %v2040_v52 = vpop.permute.xlu0 %2039 }
 0x6ae   :  { %v2041_v60 = vunpack.i.l.bf16 %v2040_v52 }
 0x709   :  { %v1319_v21 = vpop.f32.mrb[32].mxu1 }
 0x70a   :  { %v1449_v22 = vmul.f32 %v1319_v21, %v2246_v33  ;;  %v1945_v15 = vpop.f32.mrb[33].mxu1 }
 0x70b   :  { %v1322_v27 = vpop.f32.mrb[34].mxu1 }
 0x70c   :  { %v1450_v18 = vmul.f32 %v1322_v27, %v2248_v35  ;;  %v1946_v34 = vpop.f32.mrb[35].mxu1  ;;  %v1489_v8 = vsel %vm692_vm3, %v1449_v22, %v2031_v63  ;;  %v2046_v35 = vunpack.i.l.bf16 %v2045_v20 }
 0x70e   :  { %v1490_v19 = vsel %vm692_vm3, %v1450_v18, %v2032_v62 }
 0x70f   :  { %v1497_v30 = vpack.c.bf16 %v1490_v19, %v1489_v8 }
 0x710   :  { %v1442_v11 = vpop.f32.mrb[48].mxu0 }
 0x711   :  { %v1455_v28 = vmul.f32 %v1442_v11, %v2256_v41  ;;  %v1360_v29 = vpop.f32.mrb[36].mxu1  ;;  %v1963_v37 = vpop.f32.mrb[49].mxu0  ;;  %1973 = vmatprep.mubr.msk.bf16.mxu1 %vm1163_vm4, %v1497_v30 }
 0x712   :  { %v1451_v33 = vmul.f32 %v1360_v29, %v2242_v31  ;;  %v1951_v26 = vpop.f32.mrb[37].mxu1  ;;  %v1445_v40 = vpop.f32.mrb[50].mxu0 }
 0x713   :  { %v1456_v25 = vmul.f32 %v1445_v40, %v2252_v38  ;;  %v1363_v42 = vpop.f32.mrb[38].mxu1  ;;  %v1964_v43 = vpop.f32.mrb[51].mxu0  ;;  %v1495_v41 = vsel %vm692_vm3, %v1455_v28, %v2046_v35 }
 0x714   :  { %v1452_v46 = vmul.f32 %v1363_v42, %v2244_v32  ;;  %v1952_v47 = vpop.f32.mrb[39].mxu1  ;;  %v1491_v49 = vsel %vm692_vm3, %v1451_v33, %v2036_v45  ;;  %v2042_v32 = vunpack.i.h.bf16 %v2040_v52 }
 0x715   :  { %v1496_v48 = vsel %vm692_vm3, %v1456_v25, %v2047_v24 }
 0x716   :  { %v1500_v31 = vpack.c.bf16 %v1496_v48, %v1495_v41  ;;  %v1492_v50 = vsel %vm692_vm3, %v1452_v46, %v2037_v44 }
 0x717   :  { %v1498_v51 = vpack.c.bf16 %v1492_v50, %v1491_v49 }
 0x719   :  { %v1401_v53 = vpop.f32.mrb[40].mxu1  ;;  %1974 = vmatmul.mubr.msk.bf16.vlgmr.msra.gmra.mrb[44].mxu1 %vm1163_vm4, %v1498_v51 }
 0x71a   :  { %v1453_v38 = vmul.f32 %v1401_v53, %v2254_v39  ;;  %v1957_v54 = vpop.f32.mrb[41].mxu1  ;;  %v1745_v39 = vld [vmem:[%s2606_s7] ss:$0 sm:$0xff] }
 0x71b   :  { %v1404_v55 = vpop.f32.mrb[42].mxu1 }
 0x71c   :  { %v1454_v61 = vmul.f32 %v1404_v55, %v2250_v36  ;;  %v1958_v4 = vpop.f32.mrb[43].mxu1  ;;  %v1493_v6 = vsel %vm692_vm3, %v1453_v38, %v2041_v60 }
 0x71e   :  { %v1494_v57 = vsel %vm692_vm3, %v1454_v61, %v2042_v32 }
 0x71f   :  { %v1499_v58 = vpack.c.bf16 %v1494_v57, %v1493_v6 }
 0x721   :  { %1977 = vmatprep.mubr.msk.bf16.mxu1 %vm1163_vm4, %v1499_v58 }
 0x722   :  { %1978 = vmatmul.mubr.msk.bf16.gmra.mrb[48].mxu1 %vm1163_vm4, %v1500_v31 }
 0x7ec   :  { %v1975_v1 = vpop.f32.mrb[44].mxu1 }
 0x7ed   :  { %v1586_v2 = vadd.f32 %v1975_v1, %v1745_v39  ;;  %v1577_v56 = vpop.f32.mrb[45].mxu1 }
 0x7ee   :  { %v1976_v59 = vpop.f32.mrb[46].mxu1  ;;  %v1578_v13 = vadd.f32 %v1745_v39, %v1577_v56 }
 0x7ef   :  { %1612 = vmax.xlane.f32.xlu0 %v1586_v2  ;;  %v1580_v36 = vpop.f32.mrb[47].mxu1  ;;  %v1589_v3 = vadd.f32 %v1976_v59, %v1745_v39 }
 0x7f0   :  { %v1581_v10 = vadd.f32 %v1745_v39, %v1580_v36 }
 0x7f2   :  { %1610 = vmax.xlane.f32.xlu1 %v1581_v10 }
 0x7f3   :  { %1608 = vmax.xlane.f32.xlu0 %v1578_v13 }
 0x7f5   :  { %v1979_v5 = vpop.f32.mrb[48].mxu1 }
 0x7f6   :  { %v1593_v12 = vpop.f32.mrb[49].mxu1  ;;  %v1602_v0 = vadd.f32 %v1979_v5, %v1745_v39 }
 0x7f7   :  { %v1594_v14 = vadd.f32 %v1745_v39, %v1593_v12  ;;  %v1980_v7 = vpop.f32.mrb[50].mxu1  ;;  %1614 = vmax.xlane.f32.xlu0 %v1589_v3 }
 0x7f8   :  { %v1596_v9 = vpop.f32.mrb[51].mxu1  ;;  %v1605_v23 = vadd.f32 %v1980_v7, %v1745_v39 }
 0x7f9   :  { %v1597_v17 = vadd.f32 %v1745_v39, %v1596_v9  ;;  %1616 = vmax.xlane.f32.xlu1 %v1594_v14 }
 0x7fb   :  { %1618 = vmax.xlane.f32.xlu0 %v1597_v17 }
 0x7fd   :  { %1620 = vmax.xlane.f32.xlu1 %v1602_v0 }
 0x7ff   :  { %1622 = vmax.xlane.f32.xlu0 %v1605_v23 }
 0x87c   :  { %v1613_v21 = vpop.xlane.xlu0 %1612 }
 0x87d   :  { %v2543_v22 = vsub.f32 %v1586_v2, %v1613_v21 }
 0x87f   :  { %v1636_v15 = vmul.f32 1.442695, %v2543_v22  ;;  %v1611_v62 = vpop.xlane.xlu1 %1610 }
 0x880   :  { %v1609_v27 = vpop.xlane.xlu0 %1608  ;;  %v2549_v34 = vsub.f32 %v1581_v10, %v1611_v62 }
 0x881   :  { %2065 = vpow2.f32 %v1636_v15  ;;  %v2546_v16 = vsub.f32 %v1578_v13, %v1609_v27 }
 0x882   :  { %v1634_v28 = vmul.f32 1.442695, %v2549_v34 }
 0x883   :  { %v1632_v63 = vmul.f32 1.442695, %v2546_v16 }
 0x884   :  { %v1615_v18 = vpop.xlane.xlu0 %1614 }
 0x885   :  { %2067 = vpow2.f32 %v1632_v63  ;;  %v2551_v8 = vsub.f32 %v1589_v3, %v1615_v18 }
 0x886   :  { %v1617_v19 = vpop.xlane.xlu1 %1616 }
 0x887   :  { %v1638_v30 = vmul.f32 1.442695, %v2551_v8  ;;  %v2554_v20 = vsub.f32 %v1594_v14, %v1617_v19 }
 0x888   :  { %v1619_v11 = vpop.xlane.xlu0 %1618 }
 0x889   :  { %2069 = vpow2.f32 %v1638_v30  ;;  %v1640_v29 = vmul.f32 1.442695, %v2554_v20  ;;  %v2558_v37 = vsub.f32 %v1597_v17, %v1619_v11 }
 0x88a   :  { %v1621_v33 = vpop.xlane.xlu1 %1620 }
 0x88b   :  { %v2066_v26 = vpop.eup %2065  ;;  %2071 = vpow2.f32 %v1640_v29  ;;  %v2560_v40 = vsub.f32 %v1602_v0, %v1621_v33  ;;  %v1642_v35 = vmul.f32 1.442695, %v2558_v37 }
 0x88c   :  { %1652 = vadd.xlane.f32.xlu1 %v2066_v26  ;;  %v1623_v24 = vpop.xlane.xlu0 %1622  ;;  %2073 = vpow2.f32 %v1634_v28 }
 0x88d   :  { %v1644_v25 = vmul.f32 1.442695, %v2560_v40  ;;  %v2564_v42 = vsub.f32 %v1605_v23, %v1623_v24 }
 0x88f   :  { %v2068_v43 = vpop.eup %2067  ;;  %2075 = vpow2.f32 %v1644_v25  ;;  %v1646_v44 = vmul.f32 1.442695, %v2564_v42 }
 0x890   :  { %1648 = vadd.xlane.f32.xlu1 %v2068_v43  ;;  %2077 = vpow2.f32 %v1642_v35 }
 0x891   :  { %2079 = vpow2.f32 %v1646_v44 }
 0x893   :  { %v2070_v45 = vpop.eup %2069 }
 0x894   :  { %1654 = vadd.xlane.f32.xlu0 %v2070_v45 }
 0x895   :  { %v2072_v46 = vpop.eup %2071 }
 0x896   :  { %1656 = vadd.xlane.f32.xlu1 %v2072_v46  ;;  %v2074_v47 = vpop.eup %2073 }
 0x898   :  { %1650 = vadd.xlane.f32.xlu0 %v2074_v47 }
 0x899   :  { %v2076_v41 = vpop.eup %2075 }
 0x89a   :  { %1660 = vadd.xlane.f32.xlu1 %v2076_v41  ;;  %v2078_v48 = vpop.eup %2077 }
 0x89b   :  { %v2080_v49 = vpop.eup %2079 }
 0x89c   :  { %1658 = vadd.xlane.f32.xlu0 %v2078_v48 }
 0x8a0   :  { %1662 = vadd.xlane.f32.xlu0 %v2080_v49 }
 0x919   :  { %v1653_v31 = vpop.xlane.xlu1 %1652 }
 0x91a   :  { %2081 = vlog2.f32 %v1653_v31 }
 0x91d   :  { %v1649_v50 = vpop.xlane.xlu1 %1648 }
 0x91e   :  { %2083 = vlog2.f32 %v1649_v50 }
 0x921   :  { %v1655_v51 = vpop.xlane.xlu0 %1654 }
 0x922   :  { %2085 = vlog2.f32 %v1655_v51 }
 0x923   :  { %v1657_v52 = vpop.xlane.xlu1 %1656 }
 0x924   :  { %v2082_v53 = vpop.eup %2081  ;;  %2087 = vlog2.f32 %v1657_v52 }
 0x925   :  { %v1669_v38 = vmul.f32 0.6931472, %v2082_v53  ;;  %v1651_v54 = vpop.xlane.xlu0 %1650 }
 0x926   :  { %2089 = vlog2.f32 %v1651_v54 }
 0x927   :  { %v1682_v55 = vsub.f32 %v2543_v22, %v1669_v38  ;;  %v1661_v32 = vpop.xlane.xlu1 %1660 }
 0x928   :  { %v2084_v60 = vpop.eup %2083  ;;  %2091 = vlog2.f32 %v1661_v32 }
 0x929   :  { %1690 = vst [vmem:[%s2607_s8 + $0x10] sm:$0xff] %v1682_v55  ;;  %v1665_v61 = vmul.f32 0.6931472, %v2084_v60  ;;  %v1659_v4 = vpop.xlane.xlu0 %1658 }
 0x92a   :  { %2093 = vlog2.f32 %v1659_v4 }
 0x92b   :  { %v1680_v6 = vsub.f32 %v2546_v16, %v1665_v61 }
 0x92c   :  { %v2086_v57 = vpop.eup %2085 }
 0x92d   :  { %1688 = vst [vmem:[%s2607_s8] sm:$0xff] %v1680_v6  ;;  %v1671_v58 = vmul.f32 0.6931472, %v2086_v57  ;;  %v1663_v39 = vpop.xlane.xlu0 %1662 }
 0x92e   :  { %v2088_v1 = vpop.eup %2087  ;;  %2095 = vlog2.f32 %v1663_v39 }
 0x92f   :  { %v1683_v2 = vsub.f32 %v2551_v8, %v1671_v58  ;;  %v1673_v56 = vmul.f32 0.6931472, %v2088_v1 }
 0x930   :  { %v2090_v59 = vpop.eup %2089 }
 0x931   :  { %1691 = vst [vmem:[%s2607_s8 + $0x18] sm:$0xff] %v1683_v2  ;;  %v1684_v36 = vsub.f32 %v2554_v20, %v1673_v56  ;;  %v1667_v10 = vmul.f32 0.6931472, %v2090_v59 }
 0x932   :  { %v2092_v13 = vpop.eup %2091 }
 0x933   :  { %1692 = vst [vmem:[%s2607_s8 + $0x20] sm:$0xff] %v1684_v36  ;;  %v1681_v3 = vsub.f32 %v2549_v34, %v1667_v10  ;;  %v1677_v5 = vmul.f32 0.6931472, %v2092_v13 }
 0x934   :  { %v2094_v12 = vpop.eup %2093 }
 0x935   :  { %1689 = vst [vmem:[%s2607_s8 + $0x8] sm:$0xff] %v1681_v3  ;;  %v1686_v14 = vsub.f32 %v2560_v40, %v1677_v5  ;;  %v1675_v7 = vmul.f32 0.6931472, %v2094_v12 }
 0x937   :  { %1694 = vst [vmem:[%s2607_s8 + $0x30] sm:$0xff] %v1686_v14  ;;  %v1685_v9 = vsub.f32 %v2558_v37, %v1675_v7 }
 0x938   :  { %v2096_v17 = vpop.eup %2095 }
 0x939   :  { %1693 = vst [vmem:[%s2607_s8 + $0x28] sm:$0xff] %v1685_v9  ;;  %v1679_v0 = vmul.f32 0.6931472, %v2096_v17 }
 0x93b   :  { %v1687_v23 = vsub.f32 %v2564_v42, %v1679_v0 }
 0x93d   :  { %1695 = vst [vmem:[%s2607_s8 + $0x38] sm:$0xff] %v1687_v23 }

</bundles_post_ra>
